<compile_context>
chip_gen: v7x
topology: tpu7x:2x2x1
jax: 0.10.0
libtpu: 0.0.40
codegen_flags: <defaults>
</compile_context>

<pallas_src>
import functools

import jax
import jax.numpy as jnp
from jax import lax
from jax.experimental import pallas as pl
from jax.experimental.pallas import tpu as pltpu

_LANES = 128
_BN_EPS = 1e-5
_LRELU_SLOPE = 0.1


def _round_up(x, m):
    return ((x + m - 1) // m) * m


def _vmem_budget_bytes():
    cap = 64 * 1024 * 1024
    try:
        info = pltpu.get_tpu_info()
        cap = int(getattr(info, "vmem_capacity_bytes", cap))
    except Exception:
        pass
    # Leave headroom for double-buffering / compiler scratch.
    return max(16 * 1024 * 1024, min(cap * 3 // 4, 100 * 1024 * 1024))


_VMEM_BUDGET = _vmem_budget_bytes()


def _pick_rows(total, cap):
    """Largest divisor of `total` that is <= cap and sublane-aligned (or full)."""
    cap = int(max(1, cap))
    best = None
    for d in range(1, min(total, cap) + 1):
        if total % d == 0 and (d % 8 == 0 or d == total):
            best = d
    return best if best is not None else total


def _phase_geom(k, s, p):
    """Per output phase r: kernel-tap column c, base offset d, #taps nt."""
    ph = []
    for r in range(s):
        c = (r + p) % s
        d = (r + p) // s
        nt = max(0, (k - c + s - 1) // s)       # taps kh = c + m*s < k
        ph.append((c, d, nt))
    e_min = min(d - (nt - 1) for (_, d, nt) in ph if nt > 0)
    e_max = max(d for (_, d, nt) in ph if nt > 0)
    return ph, e_min, e_max


@functools.partial(jax.jit, static_argnames=("stride", "padding", "compute_dtype"))
def block_forward(x_nchw, weight, bias, gamma, beta, *, stride, padding,
                  compute_dtype=jnp.bfloat16):
    """Block forward. x_nchw: (N, Cin, H, W) f32.
    weight: (Cin, Cout, kH, kW) (PyTorch ConvTranspose2d layout),
    bias/gamma/beta: (Cout,).  Returns (N, Cout, Hout, Wout) f32."""
    del bias
    # TODO(synk): the bias only cancels because BatchNorm uses batch (training
    # mode) statistics; an eval-mode (running-stats) variant must add it back.

    s_h, s_w = stride
    p_h, p_w = padding
    N, Cin, H, W = x_nchw.shape
    _, Cout, kH, kW = weight.shape
    Hout = (H - 1) * s_h - 2 * p_h + kH
    Wout = (W - 1) * s_w - 2 * p_w + kW
    assert Hout > 0 and Wout > 0
    # TODO(synk): configs where Hout/Wout are not multiples of the stride need
    # ragged per-phase extents + masked statistics; standard upsampling configs
    # (k - 2*pad divisible by stride) are handled.
    assert Hout % s_h == 0 and Wout % s_w == 0
    Qh, Qw = Hout // s_h, Wout // s_w
    P = s_h * s_w
    M = Qh * Qw

    # ---- phase geometry & union tap window ----------------------------------
    ph_h, eh_min, eh_max = _phase_geom(kH, s_h, p_h)
    ph_w, ew_min, ew_max = _phase_geom(kW, s_w, p_w)
    Eh = eh_max - eh_min + 1
    Ew = ew_max - ew_min + 1
    K = Eh * Ew * Cin
    Kp = _round_up(K, 8)
    Cpack = _round_up(P * Cout, _LANES)
    # TODO(synk): when P*Cout >> 128 and padding % stride != 0, a per-phase
    # (lane-unpacked) variant avoids the union-tap FLOP inflation.

    # ---- packed weight: Wp[(th*Ew+tw)*Cin+ci, (rh*s_w+rw)*Cout+co] -----------
    w_pk = jnp.zeros((Kp, Cpack), compute_dtype)
    for rh in range(s_h):
        ch, dh, nth = ph_h[rh]
        for rw in range(s_w):
            cw, dw, ntw = ph_w[rw]
            lane0 = (rh * s_w + rw) * Cout
            for th in range(Eh):
                mh = dh - (eh_min + th)
                if not (0 <= mh < nth):
                    continue
                for tw in range(Ew):
                    mw = dw - (ew_min + tw)
                    if not (0 <= mw < ntw):
                        continue
                    k0 = (th * Ew + tw) * Cin
                    w_pk = w_pk.at[k0:k0 + Cin, lane0:lane0 + Cout].set(
                        weight[:, :, ch + mh * s_h, cw + mw * s_w]
                        .astype(compute_dtype))

    # ---- wrapper-side im2col (cheap vs. the output when Cin << 128) ----------
    # TODO(synk): for large Cin the Eh*Ew-fold im2col expansion should move into
    # the kernel (in-kernel tap concat from the NHWC input).
    pl_h = max(0, -eh_min)
    pl_w = max(0, -ew_min)
    pr_h = max(0, (Qh - 1) + eh_max - (H - 1))
    pr_w = max(0, (Qw - 1) + ew_max - (W - 1))
    x_nhwc = jnp.transpose(x_nchw, (0, 2, 3, 1)).astype(compute_dtype)
    x_pad = jnp.pad(x_nhwc, ((0, 0), (pl_h, pr_h), (pl_w, pr_w), (0, 0)))
    cols = []
    for th in range(Eh):
        r0 = eh_min + th + pl_h
        for tw in range(Ew):
            c0 = ew_min + tw + pl_w
            cols.append(x_pad[:, r0:r0 + Qh, c0:c0 + Qw, :])
    xcol = jnp.concatenate(cols, axis=-1)                    # (N, Qh, Qw, K)
    if Kp > K:
        xcol = jnp.pad(xcol, ((0, 0), (0, 0), (0, 0), (0, Kp - K)))
    xcol = xcol.reshape(N, M, Kp)

    y_dtype = (jnp.float32 if jnp.dtype(compute_dtype) == jnp.dtype(jnp.float32)
               else jnp.bfloat16)
    c_isz = jnp.dtype(compute_dtype).itemsize
    y_isz = jnp.dtype(y_dtype).itemsize

    # ---- pass-1 row-chunk size: bound f32 accumulator + fit the VMEM budget --
    acc_cap = max(8, (64 * 1024) // (4 * Cpack))
    fixed = 2 * Kp * Cpack * c_isz + 4 * Cpack * 4 + (2 << 20)
    per_row = 2 * (_round_up(Kp, _LANES) * c_isz + Cpack * y_isz)
    vmem_cap = max(8, (_VMEM_BUDGET - fixed) // per_row)
    CHR = _pick_rows(M, min(acc_cap, vmem_cap))
    NC = M // CHR

    # ---------------- pass 1: im2col matmul + per-chunk channel stats ---------
    def conv_kernel(xc_ref, w_ref, y_ref, st_ref):
        acc = jnp.dot(xc_ref[0], w_ref[...], preferred_element_type=jnp.float32)
        st_ref[0, 0, 0:1, :] = jnp.sum(acc, axis=0, keepdims=True)
        st_ref[0, 0, 1:2, :] = jnp.sum(acc * acc, axis=0, keepdims=True)
        y_ref[0] = acc.astype(y_dtype)

    y, stats = pl.pallas_call(
        conv_kernel,
        grid=(N, NC),
        in_specs=[
            pl.BlockSpec((1, CHR, Kp), lambda n, c: (n, c, 0)),
            pl.BlockSpec((Kp, Cpack), lambda n, c: (0, 0)),
        ],
        out_specs=[
            pl.BlockSpec((1, CHR, Cpack), lambda n, c: (n, c, 0)),
            pl.BlockSpec((1, 1, 2, Cpack), lambda n, c: (n, c, 0, 0)),
        ],
        out_shape=[
            jax.ShapeDtypeStruct((N, M, Cpack), y_dtype),
            jax.ShapeDtypeStruct((N, NC, 2, Cpack), jnp.float32),
        ],
        compiler_params=pltpu.CompilerParams(
            dimension_semantics=("parallel", "parallel"),
            vmem_limit_bytes=_VMEM_BUDGET),
    )(xcol, w_pk)

    # ---- full-batch BN statistics (tiny wrapper reduction) -------------------
    stats_tot = jnp.sum(stats, axis=(0, 1))                  # (2, Cpack) f32
    su = stats_tot[:, :P * Cout].reshape(2, P, Cout)
    s1 = jnp.sum(su[0], axis=0)
    s2 = jnp.sum(su[1], axis=0)
    inv_cnt = 1.0 / float(N * Hout * Wout)
    mean = s1 * inv_cnt
    # TODO(synk): E[y^2] - E[y]^2 in f32 can lose precision for large-mean
    # activations; switch to shifted/Welford sums if tighter accuracy is needed.
    var = jnp.maximum(s2 * inv_cnt - mean * mean, 0.0)
    scale_c = gamma.astype(jnp.float32) * lax.rsqrt(var + _BN_EPS)
    shift_c = beta.astype(jnp.float32) - mean * scale_c
    scale_l = jnp.zeros((1, Cpack), jnp.float32).at[0, :P * Cout].set(
        jnp.tile(scale_c, P))
    shift_l = jnp.zeros((1, Cpack), jnp.float32).at[0, :P * Cout].set(
        jnp.tile(shift_c, P))

    # ---------------- pass 2: BatchNorm + LeakyReLU (f32 epilogue) ------------
    per_row2 = 2 * (Cpack * y_isz + Cpack * 4)
    cap2 = max(8, (_VMEM_BUDGET - (2 << 20)) // per_row2)
    TM = _pick_rows(M, min(cap2, 8192))
    NT = M // TM

    def bn_lrelu_kernel(y_ref, sc_ref, sh_ref, o_ref):
        z = y_ref[...].astype(jnp.float32) * sc_ref[...] + sh_ref[...]
        o_ref[...] = jnp.where(z > 0, z, _LRELU_SLOPE * z)

    out_pk = pl.pallas_call(
        bn_lrelu_kernel,
        grid=(N, NT),
        in_specs=[
            pl.BlockSpec((1, TM, Cpack), lambda n, t: (n, t, 0)),
            pl.BlockSpec((1, Cpack), lambda n, t: (0, 0)),
            pl.BlockSpec((1, Cpack), lambda n, t: (0, 0)),
        ],
        out_specs=pl.BlockSpec((1, TM, Cpack), lambda n, t: (n, t, 0)),
        out_shape=jax.ShapeDtypeStruct((N, M, Cpack), jnp.float32),
        compiler_params=pltpu.CompilerParams(
            dimension_semantics=("parallel", "parallel"),
            vmem_limit_bytes=_VMEM_BUDGET),
    )(y, scale_l, shift_l)

    # Drop lane padding; de-interleave phases inside the (required) NCHW transpose.
    out = out_pk[..., :P * Cout].reshape(N, Qh, Qw, s_h, s_w, Cout)
    out = jnp.transpose(out, (0, 5, 1, 3, 2, 4))
    return out.reshape(N, Cout, Hout, Wout)


def _reference_forward(x, weight, bias, gamma, beta, stride, padding):
    """Pure-JAX reference matching PyTorch semantics (for verification)."""
    s_h, s_w = stride
    p_h, p_w = padding
    Cin, Cout, kH, kW = weight.shape
    w_oihw = jnp.transpose(weight[:, :, ::-1, ::-1], (1, 0, 2, 3))
    y = lax.conv_general_dilated(
        x, w_oihw,
        window_strides=(1, 1),
        padding=[(kH - 1 - p_h, kH - 1 - p_h), (kW - 1 - p_w, kW - 1 - p_w)],
        lhs_dilation=(s_h, s_w),
        dimension_numbers=("NCHW", "OIHW", "NCHW"),
    ) + bias[None, :, None, None]
    mean = jnp.mean(y, axis=(0, 2, 3), keepdims=True)
    var = jnp.mean((y - mean) ** 2, axis=(0, 2, 3), keepdims=True)
    y = (y - mean) * lax.rsqrt(var + _BN_EPS)
    y = y * gamma[None, :, None, None] + beta[None, :, None, None]
    return jnp.where(y > 0, y, _LRELU_SLOPE * y)


if __name__ == "__main__":
    N, Cin, H, W = 2, 4, 16, 16
    Cout = 8
    kH = kW = 4
    stride = (2, 2)
    padding = (1, 1)

    key = jax.random.PRNGKey(0)
    kx, kw_, kb, kg, kbe = jax.random.split(key, 5)
    x = jax.random.normal(kx, (N, Cin, H, W), jnp.float32)
    weight = jax.random.normal(kw_, (Cin, Cout, kH, kW), jnp.float32) * 0.1
    bias = jax.random.normal(kb, (Cout,), jnp.float32) * 0.1
    gamma = 1.0 + 0.1 * jax.random.normal(kg, (Cout,), jnp.float32)
    beta = 0.1 * jax.random.normal(kbe, (Cout,), jnp.float32)

    ref = _reference_forward(x, weight, bias, gamma, beta, stride, padding)
    Hout = (H - 1) * 2 - 2 + kH
    Wout = (W - 1) * 2 - 2 + kW
    assert ref.shape == (N, Cout, Hout, Wout)

    # f32 MXU operands + f32 intermediate: tight numerical check.
    out_f32 = block_forward(x, weight, bias, gamma, beta, stride=stride,
                            padding=padding, compute_dtype=jnp.float32)
    out_f32 = jax.block_until_ready(out_f32)
    assert out_f32.shape == ref.shape
    err32 = float(jnp.max(jnp.abs(out_f32 - ref)))
    assert jnp.allclose(out_f32, ref, rtol=1e-3, atol=1e-3), err32

    # bf16 MXU operands + bf16 intermediate (f32 accumulation / f32 epilogue).
    out_bf16 = block_forward(x, weight, bias, gamma, beta, stride=stride,
                             padding=padding)
    out_bf16 = jax.block_until_ready(out_bf16)
    errbf = float(jnp.max(jnp.abs(out_bf16 - ref)))
    assert jnp.allclose(out_bf16, ref, rtol=5e-2, atol=5e-2), errbf

    print("KERNEL_OK")
</pallas_src>

<mosaic_0001>
module attributes {stable_mosaic.version = 11 : i64} {
  func.func @conv_kernel(%arg0: i32, %arg1: i32, %arg2: memref<1x128x40xf32, #tpu.memory_space<vmem>>, %arg3: memref<40x128xf32, #tpu.memory_space<vmem>>, %arg4: memref<1x128x128xf32, #tpu.memory_space<vmem>>, %arg5: memref<1x1x2x128xf32, #tpu.memory_space<vmem>>) attributes {dimension_semantics = [#tpu.dimension_semantics<parallel>, #tpu.dimension_semantics<parallel>], iteration_bounds = array<i64: 2, 2>, scalar_prefetch = 0 : i64, scratch_operands = 0 : i64, tpu.core_type = #tpu.core_type<tc>, window_params = [{transform_indices = @transform_0, window_bounds = array<i64: 1, 128, 40>}, {pipeline_mode = #tpu.pipeline_mode<synchronous>, transform_indices = @transform_1, window_bounds = array<i64: 40, 128>}, {transform_indices = @transform_2, window_bounds = array<i64: 1, 128, 128>}, {transform_indices = @transform_3, window_bounds = array<i64: 1, 1, 2, 128>}]} {
    %c0 = arith.constant 0 : index
    %c0_0 = arith.constant 0 : index
    %c0_1 = arith.constant 0 : index
    %0 = vector.load %arg2[%c0, %c0_0, %c0_1] : memref<1x128x40xf32, #tpu.memory_space<vmem>>, vector<1x128x40xf32>
    %1 = vector.shape_cast %0 : vector<1x128x40xf32> to vector<128x40xf32>
    %c0_2 = arith.constant 0 : index
    %c0_3 = arith.constant 0 : index
    %2 = vector.load %arg3[%c0_2, %c0_3] : memref<40x128xf32, #tpu.memory_space<vmem>>, vector<40x128xf32>
    %cst = arith.constant dense<0.000000e+00> : vector<128x128xf32>
    %3 = tpu.matmul %1, %2, %cst {dimension_numbers = #tpu.dot_dimension_numbers<[1], [0], [0], [1], [0, 0, 1, 1], [], []>} : vector<128x40xf32>, vector<40x128xf32>, vector<128x128xf32> -> vector<128x128xf32>
    %cst_4 = arith.constant dense<0.000000e+00> : vector<128xf32>
    %4 = vector.multi_reduction <add>, %3, %cst_4 [0] : vector<128x128xf32> to vector<128xf32>
    %5 = vector.shape_cast %4 : vector<128xf32> to vector<1x128xf32>
    %c0_5 = arith.constant 0 : index
    %c0_6 = arith.constant 0 : index
    %c0_7 = arith.constant 0 : index
    %c0_8 = arith.constant 0 : index
    %6 = vector.load %arg5[%c0_5, %c0_6, %c0_7, %c0_8] : memref<1x1x2x128xf32, #tpu.memory_space<vmem>>, vector<1x1x1x128xf32>
    %7 = vector.shape_cast %6 : vector<1x1x1x128xf32> to vector<1x128xf32>
    %8 = vector.shape_cast %5 : vector<1x128xf32> to vector<1x1x1x128xf32>
    tpu.vector_store %arg5[%c0_5, %c0_6, %c0_7, %c0_8], %8 {strides = array<i32>} : memref<1x1x2x128xf32, #tpu.memory_space<vmem>>, vector<1x1x1x128xf32>,
    %9 = arith.mulf %3, %3 : vector<128x128xf32>
    %cst_9 = arith.constant dense<0.000000e+00> : vector<128xf32>
    %10 = vector.multi_reduction <add>, %9, %cst_9 [0] : vector<128x128xf32> to vector<128xf32>
    %11 = vector.shape_cast %10 : vector<128xf32> to vector<1x128xf32>
    %c0_10 = arith.constant 0 : index
    %c0_11 = arith.constant 0 : index
    %c1 = arith.constant 1 : index
    %c0_12 = arith.constant 0 : index
    %12 = vector.load %arg5[%c0_10, %c0_11, %c1, %c0_12] : memref<1x1x2x128xf32, #tpu.memory_space<vmem>>, vector<1x1x1x128xf32>
    %13 = vector.shape_cast %12 : vector<1x1x1x128xf32> to vector<1x128xf32>
    %14 = vector.shape_cast %11 : vector<1x128xf32> to vector<1x1x1x128xf32>
    tpu.vector_store %arg5[%c0_10, %c0_11, %c1, %c0_12], %14 {strides = array<i32>} : memref<1x1x2x128xf32, #tpu.memory_space<vmem>>, vector<1x1x1x128xf32>,
    %c0_13 = arith.constant 0 : index
    %c0_14 = arith.constant 0 : index
    %c0_15 = arith.constant 0 : index
    %15 = vector.load %arg4[%c0_13, %c0_14, %c0_15] : memref<1x128x128xf32, #tpu.memory_space<vmem>>, vector<1x128x128xf32>
    %16 = vector.shape_cast %15 : vector<1x128x128xf32> to vector<128x128xf32>
    %17 = vector.shape_cast %3 : vector<128x128xf32> to vector<1x128x128xf32>
    tpu.vector_store %arg4[%c0_13, %c0_14, %c0_15], %17 {strides = array<i32>} : memref<1x128x128xf32, #tpu.memory_space<vmem>>, vector<1x128x128xf32>,
    return
  }
  func.func @transform_0(%arg0: i32, %arg1: i32) -> (i32, i32, i32) {
    %c0_i32 = arith.constant 0 : i32
    %c0_i32_0 = arith.constant 0 : i32
    return %arg0, %arg1, %c0_i32 : i32, i32, i32
  }
  func.func @transform_1(%arg0: i32, %arg1: i32) -> (i32, i32) {
    %c0_i32 = arith.constant 0 : i32
    %c0_i32_0 = arith.constant 0 : i32
    %c0_i32_1 = arith.constant 0 : i32
    return %c0_i32, %c0_i32_0 : i32, i32
  }
  func.func @transform_2(%arg0: i32, %arg1: i32) -> (i32, i32, i32) {
    %c0_i32 = arith.constant 0 : i32
    %c0_i32_0 = arith.constant 0 : i32
    return %arg0, %arg1, %c0_i32 : i32, i32, i32
  }
  func.func @transform_3(%arg0: i32, %arg1: i32) -> (i32, i32, i32, i32) {
    %c0_i32 = arith.constant 0 : i32
    %c0_i32_0 = arith.constant 0 : i32
    %c0_i32_1 = arith.constant 0 : i32
    return %arg0, %arg1, %c0_i32, %c0_i32_0 : i32, i32, i32, i32
  }
}

module attributes {stable_mosaic.version = 11 : i64} {
  func.func @bn_lrelu_kernel(%arg0: i32, %arg1: i32, %arg2: memref<1x256x128xf32, #tpu.memory_space<vmem>>, %arg3: memref<1x128xf32, #tpu.memory_space<vmem>>, %arg4: memref<1x128xf32, #tpu.memory_space<vmem>>, %arg5: memref<1x256x128xf32, #tpu.memory_space<vmem>>) attributes {dimension_semantics = [#tpu.dimension_semantics<parallel>, #tpu.dimension_semantics<parallel>], iteration_bounds = array<i64: 2, 1>, scalar_prefetch = 0 : i64, scratch_operands = 0 : i64, tpu.core_type = #tpu.core_type<tc>, window_params = [{transform_indices = @transform_0, window_bounds = array<i64: 1, 256, 128>}, {pipeline_mode = #tpu.pipeline_mode<synchronous>, transform_indices = @transform_1, window_bounds = array<i64: 1, 128>}, {pipeline_mode = #tpu.pipeline_mode<synchronous>, transform_indices = @transform_2, window_bounds = array<i64: 1, 128>}, {transform_indices = @transform_3, window_bounds = array<i64: 1, 256, 128>}]} {
    %c0 = arith.constant 0 : index
    %c0_0 = arith.constant 0 : index
    %c0_1 = arith.constant 0 : index
    %0 = vector.load %arg2[%c0, %c0_0, %c0_1] : memref<1x256x128xf32, #tpu.memory_space<vmem>>, vector<1x256x128xf32>
    %c0_2 = arith.constant 0 : index
    %c0_3 = arith.constant 0 : index
    %1 = vector.load %arg3[%c0_2, %c0_3] : memref<1x128xf32, #tpu.memory_space<vmem>>, vector<1x128xf32>
    %2 = vector.shape_cast %1 : vector<1x128xf32> to vector<1x1x128xf32>
    %3 = vector.broadcast %2 : vector<1x1x128xf32> to vector<1x256x128xf32>
    %4 = arith.mulf %0, %3 : vector<1x256x128xf32>
    %c0_4 = arith.constant 0 : index
    %c0_5 = arith.constant 0 : index
    %5 = vector.load %arg4[%c0_4, %c0_5] : memref<1x128xf32, #tpu.memory_space<vmem>>, vector<1x128xf32>
    %6 = vector.shape_cast %5 : vector<1x128xf32> to vector<1x1x128xf32>
    %7 = vector.broadcast %6 : vector<1x1x128xf32> to vector<1x256x128xf32>
    %8 = arith.addf %4, %7 : vector<1x256x128xf32>
    %cst = arith.constant 0.000000e+00 : f32
    %9 = vector.broadcast %cst : f32 to vector<1x256x128xf32>
    %10 = arith.cmpf ogt, %8, %9 : vector<1x256x128xf32>
    %cst_6 = arith.constant 1.000000e-01 : f32
    %11 = vector.broadcast %cst_6 : f32 to vector<1x256x128xf32>
    %12 = arith.mulf %11, %8 : vector<1x256x128xf32>
    %13 = arith.select %10, %8, %12 : vector<1x256x128xi1>, vector<1x256x128xf32>
    %c0_7 = arith.constant 0 : index
    %c0_8 = arith.constant 0 : index
    %c0_9 = arith.constant 0 : index
    %14 = vector.load %arg5[%c0_7, %c0_8, %c0_9] : memref<1x256x128xf32, #tpu.memory_space<vmem>>, vector<1x256x128xf32>
    tpu.vector_store %arg5[%c0_7, %c0_8, %c0_9], %13 {strides = array<i32>} : memref<1x256x128xf32, #tpu.memory_space<vmem>>, vector<1x256x128xf32>,
    return
  }
  func.func @transform_0(%arg0: i32, %arg1: i32) -> (i32, i32, i32) {
    %c0_i32 = arith.constant 0 : i32
    %c0_i32_0 = arith.constant 0 : i32
    return %arg0, %arg1, %c0_i32 : i32, i32, i32
  }
  func.func @transform_1(%arg0: i32, %arg1: i32) -> (i32, i32) {
    %c0_i32 = arith.constant 0 : i32
    %c0_i32_0 = arith.constant 0 : i32
    %c0_i32_1 = arith.constant 0 : i32
    return %c0_i32, %c0_i32_0 : i32, i32
  }
  func.func @transform_2(%arg0: i32, %arg1: i32) -> (i32, i32) {
    %c0_i32 = arith.constant 0 : i32
    %c0_i32_0 = arith.constant 0 : i32
    %c0_i32_1 = arith.constant 0 : i32
    return %c0_i32, %c0_i32_0 : i32, i32
  }
  func.func @transform_3(%arg0: i32, %arg1: i32) -> (i32, i32, i32) {
    %c0_i32 = arith.constant 0 : i32
    %c0_i32_0 = arith.constant 0 : i32
    return %arg0, %arg1, %c0_i32 : i32, i32, i32
  }
}

</mosaic_0001>

<bundles_post_ra>
// kernel: squeeze.34
= control target key start
LH: loop header
LB: loop body
LE: loop exit
PB: predicated region body
PF: predicated region fallthrough
CT: control target
= control target key end

     0   :  { %s37_s8 = smov 104   ;;  %vm7_vm0 = vcmask 64512   ;;  %s38_s9 = smov 112   ;;  %s55_s0 = inlined_call_operand.vmem [shape: f32[32], index: 0, kind: input, shape index: {}]   ;;  %s56_s1 = inlined_call_operand.vmem [shape: f32[4,8], index: 1, kind: output, shape index: {}]  }
   0x1   :  { %v4_v0 = vld [vmem:[%s55_s0] sm:$0x1]  ;;  %s36_s0 = smov 120  }
   0x2   :  { %5 = vst [vmem:[#allocation1] sm:$0x1] %v4_v0 }
   0x9   :  { %v9_v1 = vld [vmem:[#allocation1] sm:$0x1]  }
   0xa   :  { %v21_v2 = vld [vmem:[#allocation1] sm:$0x1]   ;;  %10 = vrot.lane.b32.xlu0 %v9_v1, %s36_s0 }
   0xb   :  { %22 = vrot.lane.b32.xlu1 %v21_v2, %s37_s8  ;;  %v6_v3 = vld [vmem:[#allocation1] sm:$0x1]  }
   0xc   :  { %v15_v4 = vld [vmem:[#allocation1] sm:$0x1]   ;;  %8 = vst.msk [vmem:[#allocation0] sm:$0x1] %vm7_vm0, %v6_v3  }
   0xe   :  { %16 = vrot.lane.b32.xlu0 %v15_v4, %s38_s9 }
  0x7c   :  { %v11_v5 = vpop.permute.xlu0 %10  }
  0x7d   :  { %v23_v6 = vpop.permute.xlu1 %22   ;;  %14 = vst.msk [vmem:[#allocation0 + $0x1] sm:$0x1] %vm7_vm0, %v11_v5  }
  0x7e   :  { %26 = vst.msk [vmem:[#allocation0 + $0x3] sm:$0x1] %vm7_vm0, %v23_v6  }
  0x80   :  { %v17_v7 = vpop.permute.xlu0 %16  }
  0x81   :  { %20 = vst.msk [vmem:[#allocation0 + $0x2] sm:$0x1] %vm7_vm0, %v17_v7  }
  0x88   :  { %v30_v8 = vld [vmem:[#allocation0] sm:$0xf] }
  0x89   :  { %32 = vst [vmem:[%s56_s1] sm:$0xf] %v30_v8 }

// kernel: block_forward.2
= control target key start
LH: loop header
LB: loop body
LE: loop exit
PB: predicated region body
PF: predicated region fallthrough
CT: control target
= control target key end

     0   :  { %s859_s12 = smov 0   ;;  %s861_s13 = smov 0   ;;  %s996_s0 = inlined_call_operand.vmem [shape: f32[2,256,40], index: 0, kind: input, shape index: {}]   ;;  %s997_s1 = inlined_call_operand.vmem [shape: f32[40,128], index: 1, kind: input, shape index: {}]   ;;  %s998_s2 = inlined_call_operand.vmem [shape: f32[2,256,128], index: 2, kind: output, shape index: {0}]   ;;  %s999_s3 = inlined_call_operand.vmem [shape: f32[2,2,2,128], index: 3, kind: output, shape index: {1}]  }
   0x1   :  { %s863_s14 = smov 0   ;;  %s865_s15 = smov 0  }
   0x2   :  { %s867_s16 = smov 0  }
   0x3 LB: > { %s23_s17 = sadd.s32 1, %s829_s14  ;;  %s26_s18 = sadd.s32 1, %s833_s15  ;;  %s837_s16 = sphi %s867_s16, %s14_s16   ;;  %s833_s15 = sphi %s865_s15, %s1003_s15   ;;  %s829_s14 = sphi %s863_s14, %s1002_s14   ;;  %s825_s13 = sphi %s861_s13, %s1001_s13   ;;  %s821_s12 = sphi %s859_s12, %s1000_s12  }
   0x4   : > { %p24_p0 = scmp.ge.s32.totalorder %s23_s17, 2  ;;  %p663_p1 = scmp.ge.s32.totalorder %s837_s16, 1 }
   0x5   : > { %p163_p2 = scmp.lt.s32.totalorder %s837_s16, 5 }
   0x6   : > { %s1005_s17 = smov (%p24_p0, %s23_s17), 0  ;;  %s1007_s18 = smov (!%p24_p0, %s26_s18), %s833_s15 }
   0x7   : > { %p164_p3 = pnand %p663_p1, %p163_p2  ;;  %p28_p4 = scmp.ge.s32.totalorder %s1007_s18, 2 }
   0x8   : > { %v247_v0 = vld [vmem:[%s997_s1] sm:$0xff] (!%p164_p3)  ;;  %v248_v1 = vld [vmem:[%s997_s1 + $0x8] sm:$0xff] (!%p164_p3)  ;;  %v249_v2 = vld [vmem:[%s997_s1 + $0x10] sm:$0xff] (!%p164_p3)  ;;  %s664_s25 = sshll.u32 (!%p164_p3), %s821_s12, 4  ;;  %p204_p5 = scmp.lt.s32.totalorder (!%p164_p3), %s825_s13, 1  ;;  %vm252_vm0 = vcmask (!%p164_p3), 326656  }
   0x9   : > { %s1009_s18 = smov (%p28_p4, %s1007_s18), 0  ;;  %167 = sbr.rel (%p164_p3) target bundleno = 283 (0x11b), region = 28 }
   0xa   : > { %v745_v3 = vpack.c.bf16 (!%p164_p3), %v248_v1, %v247_v0  ;;  %v250_v4 = vld [vmem:[%s997_s1 + $0x18] sm:$0xff] (!%p164_p3)  ;;  %p206_p6 = scmp.lt.s32.totalorder (!%p164_p3), %s664_s25, 31  ;;  %v251_v6 = vld [vmem:[%s997_s1 + $0x20] sm:$0xff] (!%p164_p3)  ;;  %p225_p7 = scmp.lt.s32.totalorder (!%p164_p3), %s821_s12, 1 }
   0xb   : > { %v749_v5 = vpack.c.bf16 (!%p164_p3), %v250_v4, %v249_v2 }
   0xc   : > { %746 = vmatprep.subr.bf16.mxu0 (!%p164_p3), %v745_v3  ;;  %753 = vmatprep.subr.bf16.mxu1 (!%p164_p3), %v745_v3 }
   0xd   : > { %748 = vmatpush3.bf16.msra.mxu0 (!%p164_p3), %v745_v3  ;;  %756 = vmatpush3.bf16.msra.mxu1 (!%p164_p3), %v745_v3 }
   0xe   : > { %750 = vmatprep.subr.bf16.mxu0 (!%p164_p3), %v749_v5  ;;  %754 = vmatprep.subr.bf16.mxu1 (!%p164_p3), %v749_v5 }
  0x10   : > { %s1011_s13 = smov (!%p204_p5, %s825_s13), 1  ;;  %s1013_s25 = smov (!%p206_p6, %s664_s25), 31 }
  0x11   : > { %s665_s28 = sshll.u32 %s1011_s13, 5  ;;  %752 = vmatpush3.bf16.msra.mxu0 %v749_v5  ;;  %757 = vmatpush3.bf16.msra.mxu1 %v749_v5  ;;  %s1015_s12 = smov (!%p225_p7, %s821_s12), 1 }
  0x12   : > { %s907_s29 = sadd.s32 %s665_s28, %s1013_s25  ;;  %719 = vmatprep.subr.mxu0 %v251_v6  ;;  %755 = vmatprep.subr.mxu1 %v251_v6  ;;  %s670_s19 = sshll.u32 %s1011_s13, 1 }
  0x13   : > { %s666_s5 = sshll.u32 %s907_s29, 3  ;;  %s228_s20 = sadd.s32 %s670_s19, %s1015_s12 }
  0x14   : > { %s918_s8 = scalar_lea.vmem %s996_s0, %s666_s5  ;;  %s957_s11 = scalar_lea.vmem %s998_s2, %s666_s5 }
  0x15   : > { %v231_v7 = vld [vmem:[%s918_s8] sm:$0xff]  ;;  %v232_v8 = vld [vmem:[%s918_s8 + $0x8] sm:$0xff]  ;;  %v233_v10 = vld [vmem:[%s918_s8 + $0x10] sm:$0xff]  ;;  %720 = vmatpush3.msra.mxu0 %v251_v6  ;;  %758 = vmatpush3.msra.mxu1 %v251_v6  ;;  %s671_s21 = sshll.u32 %s228_s20, 1 }
  0x16   : > { %721 = vmatprep.mubr.msk.f32.mxu0 %vm252_vm0, %v231_v7  ;;  %v239_v9 = vld [vmem:[%s918_s8 + $0x40] sm:$0xff]  ;;  %v240_v11 = vld [vmem:[%s918_s8 + $0x48] sm:$0xff]  ;;  %v241_v12 = vld [vmem:[%s918_s8 + $0x50] sm:$0xff]  ;;  %s230_s24 = scalar_lea.vmem %s999_s3, %s671_s21 }
  0x17   : > { %733 = vmatprep.mubr.msk.f32.mxu1 %vm252_vm0, %v239_v9  ;;  %722 = vmatmul.mubr.msk.f32.vlgmr.msra.gmra.mrb[0].mxu0 %vm252_vm0, %v232_v8  ;;  %v234_v13 = vld [vmem:[%s918_s8 + $0x18] sm:$0xff]  ;;  %v235_v15 = vld [vmem:[%s918_s8 + $0x20] sm:$0xff]  ;;  %v236_v17 = vld [vmem:[%s918_s8 + $0x28] sm:$0xff] }
  0x18   : > { %734 = vmatmul.mubr.msk.f32.vlgmr.msra.gmra.mrb[0].mxu1 %vm252_vm0, %v240_v11  ;;  %724 = vmatprep.mubr.msk.f32.mxu0 %vm252_vm0, %v233_v10  ;;  %v242_v14 = vld [vmem:[%s918_s8 + $0x58] sm:$0xff]  ;;  %v243_v16 = vld [vmem:[%s918_s8 + $0x60] sm:$0xff]  ;;  %v244_v18 = vld [vmem:[%s918_s8 + $0x68] sm:$0xff] }
  0x19   : > { %736 = vmatprep.mubr.msk.f32.mxu1 %vm252_vm0, %v241_v12  ;;  %v237_v19 = vld [vmem:[%s918_s8 + $0x30] sm:$0xff]  ;;  %v238_v21 = vld [vmem:[%s918_s8 + $0x38] sm:$0xff] }
  0x1a   : > { %v245_v20 = vld [vmem:[%s918_s8 + $0x70] sm:$0xff]  ;;  %v246_v22 = vld [vmem:[%s918_s8 + $0x78] sm:$0xff] }
  0x1b   : > { %725 = vmatmul.mubr.msk.f32.gmra.mrb[2].mxu0 %vm252_vm0, %v234_v13 }
  0x1c   : > { %737 = vmatmul.mubr.msk.f32.gmra.mrb[2].mxu1 %vm252_vm0, %v242_v14  ;;  %727 = vmatprep.mubr.msk.f32.mxu0 %vm252_vm0, %v235_v15 }
  0x1d   : > { %739 = vmatprep.mubr.msk.f32.mxu1 %vm252_vm0, %v243_v16 }
  0x1f   : > { %728 = vmatmul.mubr.msk.f32.gmra.mrb[4].mxu0 %vm252_vm0, %v236_v17 }
  0x20   : > { %740 = vmatmul.mubr.msk.f32.gmra.mrb[4].mxu1 %vm252_vm0, %v244_v18  ;;  %730 = vmatprep.mubr.msk.f32.mxu0 %vm252_vm0, %v237_v19 }
  0x21   : > { %742 = vmatprep.mubr.msk.f32.mxu1 %vm252_vm0, %v245_v20 }
  0x23   : > { %731 = vmatmul.mubr.msk.f32.gmra.mrb[6].mxu0 %vm252_vm0, %v238_v21 }
  0x24   : > { %743 = vmatmul.mubr.msk.f32.gmra.mrb[6].mxu1 %vm252_vm0, %v246_v22 }
  0xea   : > { %v723_v23 = vpop.f32.mrb[0].mxu0 }
  0xeb   : > { %v735_v24 = vpop.f32.mrb[0].mxu1  ;;  %v469_v25 = vmul.f32 %v723_v23, %v723_v23  ;;  %507 = vst [vmem:[%s957_s11 + $0x8] sm:$0xff] %v723_v23  ;;  %v367_v26 = vpop.f32.mrb[1].mxu0 }
  0xec   : > { %515 = vst [vmem:[%s957_s11 + $0x48] sm:$0xff] %v735_v24  ;;  %v407_v27 = vpop.f32.mrb[1].mxu1  ;;  %v446_v28 = vadd.f32 %v723_v23, %v367_v26  ;;  %v468_v29 = vmul.f32 %v367_v26, %v367_v26  ;;  %506 = vst [vmem:[%s957_s11] sm:$0xff] %v367_v26  ;;  %v477_v63 = vmul.f32 %v735_v24, %v735_v24 }
  0xed   : > { %514 = vst [vmem:[%s957_s11 + $0x40] sm:$0xff] %v407_v27  ;;  %v476_v60 = vmul.f32 %v407_v27, %v407_v27 }
  0xee   : > { %v484_v30 = vadd.f32 %v469_v25, %v468_v29  ;;  %v726_v31 = vpop.f32.mrb[2].mxu0 }
  0xef   : > { %v738_v32 = vpop.f32.mrb[2].mxu1  ;;  %509 = vst [vmem:[%s957_s11 + $0x18] sm:$0xff] %v726_v31  ;;  %v377_v33 = vpop.f32.mrb[3].mxu0  ;;  %v471_v37 = vmul.f32 %v726_v31, %v726_v31 }
  0xf0   : > { %517 = vst [vmem:[%s957_s11 + $0x58] sm:$0xff] %v738_v32  ;;  %v417_v34 = vpop.f32.mrb[3].mxu1  ;;  %v447_v35 = vadd.f32 %v446_v28, %v377_v33  ;;  %v470_v36 = vmul.f32 %v377_v33, %v377_v33  ;;  %508 = vst [vmem:[%s957_s11 + $0x10] sm:$0xff] %v377_v33  ;;  %v479_v5 = vmul.f32 %v738_v32, %v738_v32 }
  0xf1   : > { %516 = vst [vmem:[%s957_s11 + $0x50] sm:$0xff] %v417_v34  ;;  %v478_v2 = vmul.f32 %v417_v34, %v417_v34 }
  0xf2   : > { %v485_v38 = vadd.f32 %v484_v30, %v470_v36  ;;  %v729_v39 = vpop.f32.mrb[4].mxu0  ;;  %v448_v40 = vadd.f32 %v726_v31, %v447_v35 }
  0xf3   : > { %v741_v41 = vpop.f32.mrb[4].mxu1  ;;  %511 = vst [vmem:[%s957_s11 + $0x28] sm:$0xff] %v729_v39  ;;  %v387_v42 = vpop.f32.mrb[5].mxu0  ;;  %v473_v47 = vmul.f32 %v729_v39, %v729_v39 }
  0xf4   : > { %519 = vst [vmem:[%s957_s11 + $0x68] sm:$0xff] %v741_v41  ;;  %v427_v43 = vpop.f32.mrb[5].mxu1  ;;  %v449_v44 = vadd.f32 %v448_v40, %v387_v42  ;;  %v472_v45 = vmul.f32 %v387_v42, %v387_v42  ;;  %v486_v46 = vadd.f32 %v485_v38, %v471_v37  ;;  %510 = vst [vmem:[%s957_s11 + $0x20] sm:$0xff] %v387_v42 }
  0xf5   : > { %518 = vst [vmem:[%s957_s11 + $0x60] sm:$0xff] %v427_v43  ;;  %v480_v8 = vmul.f32 %v427_v43, %v427_v43  ;;  %v481_v11 = vmul.f32 %v741_v41, %v741_v41 }
  0xf6   : > { %v487_v48 = vadd.f32 %v486_v46, %v472_v45  ;;  %v732_v49 = vpop.f32.mrb[6].mxu0  ;;  %v450_v50 = vadd.f32 %v729_v39, %v449_v44 }
  0xf7   : > { %v744_v51 = vpop.f32.mrb[6].mxu1  ;;  %513 = vst [vmem:[%s957_s11 + $0x38] sm:$0xff] %v732_v49  ;;  %v397_v52 = vpop.f32.mrb[7].mxu0  ;;  %v475_v57 = vmul.f32 %v732_v49, %v732_v49 }
  0xf8   : > { %521 = vst [vmem:[%s957_s11 + $0x78] sm:$0xff] %v744_v51  ;;  %v437_v53 = vpop.f32.mrb[7].mxu1  ;;  %v451_v54 = vadd.f32 %v450_v50, %v397_v52  ;;  %v474_v55 = vmul.f32 %v397_v52, %v397_v52  ;;  %v488_v56 = vadd.f32 %v487_v48, %v473_v47  ;;  %512 = vst [vmem:[%s957_s11 + $0x30] sm:$0xff] %v397_v52 }
  0xf9   : > { %520 = vst [vmem:[%s957_s11 + $0x70] sm:$0xff] %v437_v53  ;;  %v482_v14 = vmul.f32 %v437_v53, %v437_v53  ;;  %v483_v17 = vmul.f32 %v744_v51, %v744_v51 }
  0xfa   : > { %v452_v58 = vadd.f32 %v732_v49, %v451_v54  ;;  %v489_v59 = vadd.f32 %v488_v56, %v474_v55 }
  0xfc   : > { %v490_v61 = vadd.f32 %v489_v59, %v475_v57  ;;  %v453_v62 = vadd.f32 %v452_v58, %v407_v27 }
  0xfe   : > { %v491_v0 = vadd.f32 %v490_v61, %v476_v60  ;;  %v454_v1 = vadd.f32 %v735_v24, %v453_v62 }
 0x100   : > { %v455_v3 = vadd.f32 %v454_v1, %v417_v34  ;;  %v492_v4 = vadd.f32 %v491_v0, %v477_v63 }
 0x102   : > { %v493_v6 = vadd.f32 %v492_v4, %v478_v2  ;;  %v456_v7 = vadd.f32 %v738_v32, %v455_v3 }
 0x104   : > { %v457_v9 = vadd.f32 %v456_v7, %v427_v43  ;;  %v494_v10 = vadd.f32 %v493_v6, %v479_v5 }
 0x106   : > { %v495_v12 = vadd.f32 %v494_v10, %v480_v8  ;;  %v458_v13 = vadd.f32 %v741_v41, %v457_v9 }
 0x108   : > { %v459_v15 = vadd.f32 %v458_v13, %v437_v53  ;;  %v496_v16 = vadd.f32 %v495_v12, %v481_v11 }
 0x10a   : > { %v460_v18 = vadd.f32 %v744_v51, %v459_v15  ;;  %v497_v19 = vadd.f32 %v496_v16, %v482_v14 }
 0x10c   : > { %v461_v20 = vrot.slane %v460_v18, 4  ;;  %v498_v21 = vadd.f32 %v497_v19, %v483_v17 }
 0x10e   : > { %v462_v22 = vadd.f32 %v461_v20, %v460_v18  ;;  %v499_v23 = vrot.slane %v498_v21, 4 }
 0x110   : > { %v463_v24 = vrot.slane %v462_v22, 2  ;;  %v500_v25 = vadd.f32 %v499_v23, %v498_v21 }
 0x112   : > { %v464_v26 = vadd.f32 %v463_v24, %v462_v22  ;;  %v501_v27 = vrot.slane %v500_v25, 2 }
 0x114   : > { %v465_v28 = vrot.slane %v464_v26, 1  ;;  %v502_v29 = vadd.f32 %v501_v27, %v500_v25 }
 0x116   : > { %v466_v30 = vadd.f32 %v465_v28, %v464_v26  ;;  %v503_v31 = vrot.slane %v502_v29, 1 }
 0x118   : > { %467 = vst [vmem:[%s230_s24] sm:$0x1] %v466_v30  ;;  %v504_v32 = vadd.f32 %v503_v31, %v502_v29 }
 0x11a   : > { %505 = vst [vmem:[%s230_s24 + $0x1] sm:$0x1] %v504_v32 }
 0x11b PF: > { %s14_s16 = sadd.s32 1, %s837_s16   ;;  %s1000_s12 = smov %s829_s14 }
 0x11c   : > { %p11_p8 = scmp.ge.s32.totalorder %s14_s16, 6   ;;  %s1001_s13 = smov %s833_s15 }
 0x11d   : > { %s1002_s14 = smov %s1005_s17  ;;  %s1003_s15 = smov %s1009_s18 }
 0x11e   :  { %13 = sbr.rel (!%p11_p8) target bundleno = 3 (0x3), region = 70 }

// kernel: block_forward.3
= control target key start
LH: loop header
LB: loop body
LE: loop exit
PB: predicated region body
PF: predicated region fallthrough
CT: control target
= control target key end

     0   :  { %s618_s12 = smov 0   ;;  %s620_s13 = smov 0   ;;  %s796_s0 = inlined_call_operand.vmem [shape: f32[2,256,128], index: 0, kind: input, shape index: {}]   ;;  %s797_s1 = inlined_call_operand.vmem [shape: f32[1,128], index: 1, kind: input, shape index: {}]   ;;  %s798_s2 = inlined_call_operand.vmem [shape: f32[1,128], index: 2, kind: input, shape index: {}]   ;;  %s799_s3 = inlined_call_operand.vmem [shape: f32[2,256,128], index: 3, kind: output, shape index: {}]  }
   0x1   :  { %s622_s14 = smov 0  }
   0x2 LB: > { %s25_s15 = sadd.s32 1, %s592_s13  ;;  %p539_p0 = scmp.ge.s32.totalorder %s596_s14, 1  ;;  %s596_s14 = sphi %s622_s14, %s13_s14   ;;  %s592_s13 = sphi %s620_s13, %s801_s13   ;;  %s588_s12 = sphi %s618_s12, %s800_s12  }
   0x3   : > { %p27_p1 = scmp.ge.s32.totalorder %s25_s15, 2  ;;  %p158_p2 = scmp.lt.s32.totalorder %s596_s14, 3 }
   0x5   : > { %s803_s15 = smov (%p27_p1, %s25_s15), 0  ;;  %p159_p3 = pnand %p539_p0, %p158_p2 }
   0x6   : > { %p191_p4 = scmp.lt.s32.totalorder (!%p159_p3), %s588_s12, 1  ;;  %v642_v0 = vld [vmem:[%s797_s1] ss:$0 sm:$0xff] (!%p159_p3) }
   0x7   : > { %162 = sbr.rel (%p159_p3) target bundleno = 63 (0x3f), region = 32  ;;  %v652_v1 = vld [vmem:[%s798_s2] ss:$0 sm:$0xff] (!%p159_p3) }
   0xe   : > { %s805_s12 = smov (!%p191_p4, %s588_s12), 1 }
   0xf   : > { %s548_s16 = sshll.u32 %s805_s12, 8 }
  0x10   : > { %s647_s21 = scalar_lea.vmem %s796_s0, %s548_s16  ;;  %s680_s26 = scalar_lea.vmem %s799_s3, %s548_s16 }
  0x11   : > { %v210_v2 = vld [vmem:[%s647_s21] sm:$0xff]  ;;  %v211_v3 = vld [vmem:[%s647_s21 + $0x8] sm:$0xff]  ;;  %v212_v4 = vld [vmem:[%s647_s21 + $0x10] sm:$0xff] }
  0x12   : > { %v249_v5 = vmul.f32 %v642_v0, %v210_v2  ;;  %v250_v6 = vmul.f32 %v642_v0, %v211_v3  ;;  %v251_v7 = vmul.f32 %v642_v0, %v212_v4  ;;  %v213_v8 = vld [vmem:[%s647_s21 + $0x18] sm:$0xff]  ;;  %v214_v9 = vld [vmem:[%s647_s21 + $0x20] sm:$0xff]  ;;  %v215_v10 = vld [vmem:[%s647_s21 + $0x28] sm:$0xff] }
  0x13   : > { %v252_v11 = vmul.f32 %v642_v0, %v213_v8  ;;  %v253_v12 = vmul.f32 %v642_v0, %v214_v9  ;;  %v254_v13 = vmul.f32 %v642_v0, %v215_v10  ;;  %v216_v14 = vld [vmem:[%s647_s21 + $0x30] sm:$0xff]  ;;  %v217_v15 = vld [vmem:[%s647_s21 + $0x38] sm:$0xff]  ;;  %v218_v24 = vld [vmem:[%s647_s21 + $0x40] sm:$0xff] }
  0x14   : > { %v288_v16 = vadd.f32 %v652_v1, %v249_v5  ;;  %v289_v17 = vadd.f32 %v652_v1, %v250_v6  ;;  %v290_v18 = vadd.f32 %v652_v1, %v251_v7  ;;  %v255_v19 = vmul.f32 %v642_v0, %v216_v14  ;;  %v219_v32 = vld [vmem:[%s647_s21 + $0x48] sm:$0xff]  ;;  %v220_v33 = vld [vmem:[%s647_s21 + $0x50] sm:$0xff]  ;;  %v221_v34 = vld [vmem:[%s647_s21 + $0x58] sm:$0xff] }
  0x15   : > { %v291_v20 = vadd.f32 %v652_v1, %v252_v11  ;;  %v292_v21 = vadd.f32 %v652_v1, %v253_v12  ;;  %v293_v22 = vadd.f32 %v652_v1, %v254_v13  ;;  %v256_v23 = vmul.f32 %v642_v0, %v217_v15  ;;  %v222_v46 = vld [vmem:[%s647_s21 + $0x60] sm:$0xff]  ;;  %v223_v47 = vld [vmem:[%s647_s21 + $0x68] sm:$0xff]  ;;  %v224_v58 = vld [vmem:[%s647_s21 + $0x70] sm:$0xff] }
  0x16   : > { %vm320_vm0 = vcmp.gt.f32.partialorder %v288_v16, 0.0  ;;  %v352_v25 = vmul.f32 0.1, %v288_v16  ;;  %vm321_vm1 = vcmp.gt.f32.partialorder %v289_v17, 0.0  ;;  %v353_v26 = vmul.f32 0.1, %v289_v17 }
  0x17   : > { %vm322_vm2 = vcmp.gt.f32.partialorder %v290_v18, 0.0  ;;  %v354_v27 = vmul.f32 0.1, %v290_v18  ;;  %vm323_vm3 = vcmp.gt.f32.partialorder %v291_v20, 0.0  ;;  %v355_v28 = vmul.f32 0.1, %v291_v20 }
  0x18   : > { %v384_v29 = vsel %vm320_vm0, %v288_v16, %v352_v25  ;;  %v385_v30 = vsel %vm321_vm1, %v289_v17, %v353_v26  ;;  %vm324_vm4 = vcmp.gt.f32.partialorder %v292_v21, 0.0  ;;  %v356_v31 = vmul.f32 0.1, %v292_v21  ;;  %v225_v59 = vld [vmem:[%s647_s21 + $0x78] sm:$0xff]  ;;  %v226_v6 = vld [vmem:[%s647_s21 + $0x80] sm:$0xff]  ;;  %v227_v7 = vld [vmem:[%s647_s21 + $0x88] sm:$0xff] }
  0x19   : > { %416 = vst [vmem:[%s680_s26] sm:$0xff] %v384_v29  ;;  %417 = vst [vmem:[%s680_s26 + $0x8] sm:$0xff] %v385_v30  ;;  %v386_v35 = vsel %vm322_vm2, %v290_v18, %v354_v27  ;;  %v387_v36 = vsel %vm323_vm3, %v291_v20, %v355_v28  ;;  %vm325_vm5 = vcmp.gt.f32.partialorder %v293_v22, 0.0  ;;  %v357_v37 = vmul.f32 0.1, %v293_v22  ;;  %v228_v12 = vld [vmem:[%s647_s21 + $0x90] sm:$0xff]  ;;  %v229_v13 = vld [vmem:[%s647_s21 + $0x98] sm:$0xff] }
  0x1a   : > { %418 = vst [vmem:[%s680_s26 + $0x10] sm:$0xff] %v386_v35  ;;  %419 = vst [vmem:[%s680_s26 + $0x18] sm:$0xff] %v387_v36  ;;  %v388_v38 = vsel %vm324_vm4, %v292_v21, %v356_v31  ;;  %v294_v39 = vadd.f32 %v652_v1, %v255_v19  ;;  %v295_v40 = vadd.f32 %v652_v1, %v256_v23  ;;  %v231_v25 = vld [vmem:[%s647_s21 + $0xa8] sm:$0xff]  ;;  %v232_v36 = vld [vmem:[%s647_s21 + $0xb0] sm:$0xff] }
  0x1b   : > { %v257_v41 = vmul.f32 %v642_v0, %v218_v24  ;;  %420 = vst [vmem:[%s680_s26 + $0x20] sm:$0xff] %v388_v38  ;;  %v389_v42 = vsel %vm325_vm5, %v293_v22, %v357_v37  ;;  %v258_v43 = vmul.f32 %v642_v0, %v219_v32  ;;  %v259_v44 = vmul.f32 %v642_v0, %v220_v33  ;;  %v230_v24 = vld [vmem:[%s647_s21 + $0xa0] sm:$0xff]  ;;  %v233_v37 = vld [vmem:[%s647_s21 + $0xb8] sm:$0xff] }
  0x1c   : > { %v260_v45 = vmul.f32 %v642_v0, %v221_v34  ;;  %421 = vst [vmem:[%s680_s26 + $0x28] sm:$0xff] %v389_v42  ;;  %vm326_vm6 = vcmp.gt.f32.partialorder %v294_v39, 0.0  ;;  %v358_v48 = vmul.f32 0.1, %v294_v39  ;;  %vm327_vm7 = vcmp.gt.f32.partialorder %v295_v40, 0.0 }
  0x1d   : > { %v359_v49 = vmul.f32 0.1, %v295_v40  ;;  %v296_v50 = vadd.f32 %v652_v1, %v257_v41  ;;  %v297_v51 = vadd.f32 %v652_v1, %v258_v43  ;;  %v298_v52 = vadd.f32 %v652_v1, %v259_v44 }
  0x1e   : > { %v299_v53 = vadd.f32 %v652_v1, %v260_v45  ;;  %v390_v54 = vsel %vm326_vm6, %v294_v39, %v358_v48  ;;  %v261_v56 = vmul.f32 %v642_v0, %v222_v46  ;;  %v262_v57 = vmul.f32 %v642_v0, %v223_v47  ;;  %v234_v46 = vld [vmem:[%s647_s21 + $0xc0] sm:$0xff]  ;;  %v235_v47 = vld [vmem:[%s647_s21 + $0xc8] sm:$0xff] }
  0x1f   : > { %v391_v55 = vsel %vm327_vm7, %v295_v40, %v359_v49  ;;  %422 = vst [vmem:[%s680_s26 + $0x30] sm:$0xff] %v390_v54  ;;  %vm328_vm8 = vcmp.gt.f32.partialorder %v296_v50, 0.0  ;;  %v360_v60 = vmul.f32 0.1, %v296_v50  ;;  %vm329_vm9 = vcmp.gt.f32.partialorder %v297_v51, 0.0 }
  0x20   : > { %423 = vst [vmem:[%s680_s26 + $0x38] sm:$0xff] %v391_v55  ;;  %v361_v61 = vmul.f32 0.1, %v297_v51  ;;  %vm330_vm10 = vcmp.gt.f32.partialorder %v298_v52, 0.0  ;;  %v362_v62 = vmul.f32 0.1, %v298_v52  ;;  %v300_v4 = vadd.f32 %v652_v1, %v261_v56 }
  0x21   : > { %vm331_vm11 = vcmp.gt.f32.partialorder %v299_v53, 0.0  ;;  %v363_v63 = vmul.f32 0.1, %v299_v53  ;;  %v392_v2 = vsel %vm328_vm8, %v296_v50, %v360_v60  ;;  %v301_v5 = vadd.f32 %v652_v1, %v262_v57 }
  0x22   : > { %v393_v3 = vsel %vm329_vm9, %v297_v51, %v361_v61  ;;  %424 = vst [vmem:[%s680_s26 + $0x40] sm:$0xff] %v392_v2  ;;  %v394_v8 = vsel %vm330_vm10, %v298_v52, %v362_v62  ;;  %v263_v10 = vmul.f32 %v642_v0, %v224_v58  ;;  %v264_v11 = vmul.f32 %v642_v0, %v225_v59  ;;  %v236_v52 = vld [vmem:[%s647_s21 + $0xd0] sm:$0xff]  ;;  %v238_v2 = vld [vmem:[%s647_s21 + $0xe0] sm:$0xff] }
  0x23   : > { %425 = vst [vmem:[%s680_s26 + $0x48] sm:$0xff] %v393_v3  ;;  %v395_v9 = vsel %vm331_vm11, %v299_v53, %v363_v63  ;;  %426 = vst [vmem:[%s680_s26 + $0x50] sm:$0xff] %v394_v8  ;;  %vm332_vm12 = vcmp.gt.f32.partialorder %v300_v4, 0.0  ;;  %v364_v14 = vmul.f32 0.1, %v300_v4  ;;  %vm333_vm13 = vcmp.gt.f32.partialorder %v301_v5, 0.0 }
  0x24   : > { %427 = vst [vmem:[%s680_s26 + $0x58] sm:$0xff] %v395_v9  ;;  %v365_v15 = vmul.f32 0.1, %v301_v5  ;;  %v302_v16 = vadd.f32 %v652_v1, %v263_v10  ;;  %v303_v17 = vadd.f32 %v652_v1, %v264_v11  ;;  %v265_v18 = vmul.f32 %v642_v0, %v226_v6  ;;  %v237_v53 = vld [vmem:[%s647_s21 + $0xd8] sm:$0xff]  ;;  %v239_v3 = vld [vmem:[%s647_s21 + $0xe8] sm:$0xff] }
  0x25   : > { %v266_v19 = vmul.f32 %v642_v0, %v227_v7  ;;  %v396_v20 = vsel %vm332_vm12, %v300_v4, %v364_v14  ;;  %v267_v22 = vmul.f32 %v642_v0, %v228_v12  ;;  %v268_v23 = vmul.f32 %v642_v0, %v229_v13  ;;  %v240_v14 = vld [vmem:[%s647_s21 + $0xf0] sm:$0xff] }
  0x26   : > { %v397_v21 = vsel %vm333_vm13, %v301_v5, %v365_v15  ;;  %428 = vst [vmem:[%s680_s26 + $0x60] sm:$0xff] %v396_v20  ;;  %vm334_vm14 = vcmp.gt.f32.partialorder %v302_v16, 0.0  ;;  %v366_v26 = vmul.f32 0.1, %v302_v16  ;;  %vm335_vm15 = vcmp.gt.f32.partialorder %v303_v17, 0.0  ;;  %v241_v15 = vld [vmem:[%s647_s21 + $0xf8] sm:$0xff] }
  0x27   : > { %429 = vst [vmem:[%s680_s26 + $0x68] sm:$0xff] %v397_v21  ;;  %v367_v27 = vmul.f32 0.1, %v303_v17  ;;  %v304_v28 = vadd.f32 %v652_v1, %v265_v18  ;;  %v305_v29 = vadd.f32 %v652_v1, %v266_v19  ;;  %v306_v30 = vadd.f32 %v652_v1, %v267_v22 }
  0x28   : > { %v307_v31 = vadd.f32 %v652_v1, %v268_v23  ;;  %v398_v32 = vsel %vm334_vm14, %v302_v16, %v366_v26  ;;  %v269_v34 = vmul.f32 %v642_v0, %v230_v24  ;;  %v270_v35 = vmul.f32 %v642_v0, %v231_v25 }
  0x29   : > { %v399_v33 = vsel %vm335_vm15, %v303_v17, %v367_v27  ;;  %430 = vst [vmem:[%s680_s26 + $0x70] sm:$0xff] %v398_v32  ;;  %vm336_vm0 = vcmp.gt.f32.partialorder %v304_v28, 0.0  ;;  %v368_v38 = vmul.f32 0.1, %v304_v28  ;;  %vm337_vm1 = vcmp.gt.f32.partialorder %v305_v29, 0.0 }
  0x2a   : > { %431 = vst [vmem:[%s680_s26 + $0x78] sm:$0xff] %v399_v33  ;;  %v369_v39 = vmul.f32 0.1, %v305_v29  ;;  %vm338_vm2 = vcmp.gt.f32.partialorder %v306_v30, 0.0  ;;  %v370_v40 = vmul.f32 0.1, %v306_v30  ;;  %v308_v44 = vadd.f32 %v652_v1, %v269_v34 }
  0x2b   : > { %vm339_vm3 = vcmp.gt.f32.partialorder %v307_v31, 0.0  ;;  %v371_v41 = vmul.f32 0.1, %v307_v31  ;;  %v400_v42 = vsel %vm336_vm0, %v304_v28, %v368_v38  ;;  %v309_v45 = vadd.f32 %v652_v1, %v270_v35 }
  0x2c   : > { %v401_v43 = vsel %vm337_vm1, %v305_v29, %v369_v39  ;;  %432 = vst [vmem:[%s680_s26 + $0x80] sm:$0xff] %v400_v42  ;;  %v402_v48 = vsel %vm338_vm2, %v306_v30, %v370_v40  ;;  %v271_v50 = vmul.f32 %v642_v0, %v232_v36  ;;  %v272_v51 = vmul.f32 %v642_v0, %v233_v37 }
  0x2d   : > { %433 = vst [vmem:[%s680_s26 + $0x88] sm:$0xff] %v401_v43  ;;  %v403_v49 = vsel %vm339_vm3, %v307_v31, %v371_v41  ;;  %434 = vst [vmem:[%s680_s26 + $0x90] sm:$0xff] %v402_v48  ;;  %vm340_vm4 = vcmp.gt.f32.partialorder %v308_v44, 0.0  ;;  %v372_v54 = vmul.f32 0.1, %v308_v44  ;;  %vm341_vm5 = vcmp.gt.f32.partialorder %v309_v45, 0.0 }
  0x2e   : > { %435 = vst [vmem:[%s680_s26 + $0x98] sm:$0xff] %v403_v49  ;;  %v373_v55 = vmul.f32 0.1, %v309_v45  ;;  %v310_v56 = vadd.f32 %v652_v1, %v271_v50  ;;  %v311_v57 = vadd.f32 %v652_v1, %v272_v51  ;;  %v273_v58 = vmul.f32 %v642_v0, %v234_v46 }
  0x2f   : > { %v274_v59 = vmul.f32 %v642_v0, %v235_v47  ;;  %v404_v60 = vsel %vm340_vm4, %v308_v44, %v372_v54  ;;  %v275_v62 = vmul.f32 %v642_v0, %v236_v52  ;;  %v276_v63 = vmul.f32 %v642_v0, %v237_v53 }
  0x30   : > { %v405_v61 = vsel %vm341_vm5, %v309_v45, %v373_v55  ;;  %436 = vst [vmem:[%s680_s26 + $0xa0] sm:$0xff] %v404_v60  ;;  %vm342_vm6 = vcmp.gt.f32.partialorder %v310_v56, 0.0  ;;  %v374_v4 = vmul.f32 0.1, %v310_v56  ;;  %vm343_vm7 = vcmp.gt.f32.partialorder %v311_v57, 0.0 }
  0x31   : > { %437 = vst [vmem:[%s680_s26 + $0xa8] sm:$0xff] %v405_v61  ;;  %v375_v5 = vmul.f32 0.1, %v311_v57  ;;  %v312_v6 = vadd.f32 %v652_v1, %v273_v58  ;;  %v313_v7 = vadd.f32 %v652_v1, %v274_v59  ;;  %v314_v8 = vadd.f32 %v652_v1, %v275_v62 }
  0x32   : > { %v315_v9 = vadd.f32 %v652_v1, %v276_v63  ;;  %v406_v10 = vsel %vm342_vm6, %v310_v56, %v374_v4  ;;  %v277_v12 = vmul.f32 %v642_v0, %v238_v2  ;;  %v278_v13 = vmul.f32 %v642_v0, %v239_v3 }
  0x33   : > { %v407_v11 = vsel %vm343_vm7, %v311_v57, %v375_v5  ;;  %438 = vst [vmem:[%s680_s26 + $0xb0] sm:$0xff] %v406_v10  ;;  %vm344_vm8 = vcmp.gt.f32.partialorder %v312_v6, 0.0  ;;  %v376_v16 = vmul.f32 0.1, %v312_v6  ;;  %vm345_vm9 = vcmp.gt.f32.partialorder %v313_v7, 0.0 }
  0x34   : > { %439 = vst [vmem:[%s680_s26 + $0xb8] sm:$0xff] %v407_v11  ;;  %v377_v17 = vmul.f32 0.1, %v313_v7  ;;  %vm346_vm10 = vcmp.gt.f32.partialorder %v314_v8, 0.0  ;;  %v378_v18 = vmul.f32 0.1, %v314_v8  ;;  %v316_v22 = vadd.f32 %v652_v1, %v277_v12 }
  0x35   : > { %vm347_vm11 = vcmp.gt.f32.partialorder %v315_v9, 0.0  ;;  %v379_v19 = vmul.f32 0.1, %v315_v9  ;;  %v408_v20 = vsel %vm344_vm8, %v312_v6, %v376_v16  ;;  %v317_v23 = vadd.f32 %v652_v1, %v278_v13 }
  0x36   : > { %v409_v21 = vsel %vm345_vm9, %v313_v7, %v377_v17  ;;  %440 = vst [vmem:[%s680_s26 + $0xc0] sm:$0xff] %v408_v20  ;;  %v410_v24 = vsel %vm346_vm10, %v314_v8, %v378_v18  ;;  %v279_v26 = vmul.f32 %v642_v0, %v240_v14  ;;  %v280_v27 = vmul.f32 %v642_v0, %v241_v15 }
  0x37   : > { %441 = vst [vmem:[%s680_s26 + $0xc8] sm:$0xff] %v409_v21  ;;  %v411_v25 = vsel %vm347_vm11, %v315_v9, %v379_v19  ;;  %442 = vst [vmem:[%s680_s26 + $0xd0] sm:$0xff] %v410_v24  ;;  %vm348_vm12 = vcmp.gt.f32.partialorder %v316_v22, 0.0  ;;  %v380_v28 = vmul.f32 0.1, %v316_v22  ;;  %vm349_vm13 = vcmp.gt.f32.partialorder %v317_v23, 0.0 }
  0x38   : > { %443 = vst [vmem:[%s680_s26 + $0xd8] sm:$0xff] %v411_v25  ;;  %v381_v29 = vmul.f32 0.1, %v317_v23  ;;  %v318_v30 = vadd.f32 %v652_v1, %v279_v26  ;;  %v319_v31 = vadd.f32 %v652_v1, %v280_v27 }
  0x39   : > { %v412_v32 = vsel %vm348_vm12, %v316_v22, %v380_v28 }
  0x3a   : > { %v413_v33 = vsel %vm349_vm13, %v317_v23, %v381_v29  ;;  %444 = vst [vmem:[%s680_s26 + $0xe0] sm:$0xff] %v412_v32  ;;  %vm350_vm14 = vcmp.gt.f32.partialorder %v318_v30, 0.0  ;;  %v382_v34 = vmul.f32 0.1, %v318_v30  ;;  %vm351_vm15 = vcmp.gt.f32.partialorder %v319_v31, 0.0 }
  0x3b   : > { %445 = vst [vmem:[%s680_s26 + $0xe8] sm:$0xff] %v413_v33  ;;  %v383_v0 = vmul.f32 0.1, %v319_v31 }
  0x3c   : > { %v414_v35 = vsel %vm350_vm14, %v318_v30, %v382_v34 }
  0x3d   : > { %v415_v36 = vsel %vm351_vm15, %v319_v31, %v383_v0  ;;  %446 = vst [vmem:[%s680_s26 + $0xf0] sm:$0xff] %v414_v35 }
  0x3e   : > { %447 = vst [vmem:[%s680_s26 + $0xf8] sm:$0xff] %v415_v36 }
  0x3f PF: > { %s13_s14 = sadd.s32 1, %s596_s14   ;;  %s800_s12 = smov %s592_s13 }
  0x40   : > { %p10_p5 = scmp.ge.s32.totalorder %s13_s14, 4   ;;  %s801_s13 = smov %s803_s15 }
  0x42   :  { %12 = sbr.rel (!%p10_p5) target bundleno = 2 (0x2), region = 62 }

</bundles_post_ra>
